<compile_context>
chip_gen: v7x
topology: tpu7x:2x2x1
jax: 0.10.0
libtpu: 0.0.40
codegen_flags: <defaults>
</compile_context>

<pallas_src>
import jax
import jax.numpy as jnp
from jax.experimental import pallas as pl
from jax.experimental.pallas import tpu as pltpu


def _make_kernel(block_scale: float, out_scale: float):
    """Fused 3-block residual MLP; scales are static Python floats."""

    def kernel(x_ref, w0_ref, b0_ref, w1_ref, b1_ref, w2_ref, b2_ref, o_ref):
        mxu_dtype = w0_ref.dtype          # bf16 on the fast path, f32 on the strict path
        h = x_ref[...].astype(jnp.float32)

        # block_0: Linear + ReLU, residual add
        a = jnp.dot(h.astype(mxu_dtype), w0_ref[...],
                    preferred_element_type=jnp.float32) + b0_ref[...]
        a = jnp.maximum(a, 0.0)
        if block_scale != 1.0:            # only when scale_factor could not be folded
            a = a * block_scale
        h = a + h

        # block_1: Linear + ReLU, residual add
        a = jnp.dot(h.astype(mxu_dtype), w1_ref[...],
                    preferred_element_type=jnp.float32) + b1_ref[...]
        a = jnp.maximum(a, 0.0)
        if block_scale != 1.0:
            a = a * block_scale
        h = a + h

        # block_2: Linear (no ReLU), residual add
        a = jnp.dot(h.astype(mxu_dtype), w2_ref[...],
                    preferred_element_type=jnp.float32) + b2_ref[...]
        if block_scale != 1.0:
            a = a * block_scale
        h = a + h

        if out_scale != 1.0:
            h = h * out_scale
        o_ref[...] = h.astype(o_ref.dtype)

    return kernel


def pack_dummy_model_params(params, scale_factor=1.0, matmul_dtype=jnp.bfloat16):
    """One-time parameter packing, hoisted out of the per-forward path.

    params: 3 (weight (out,in), bias (out,)) pairs, PyTorch Linear convention.
    Produces lane-dense block-diagonal [[W^T,0],[0,W^T]] weights (matmul_dtype)
    and tiled (1, Dp) f32 biases, with scale_factor folded in when it is > 0.
    """
    assert len(params) == 3, "kernel is specialized to DummyModel's 3 residual blocks"
    D = params[0][0].shape[1]
    for (w, b) in params:
        assert w.shape == (D, D) and b.shape == (D,), "DummyModel uses square blocks"

    # Lane-dense packing: fold `pf` logical rows into one 128-wide packed row.
    # NOTE: requires D to divide 128; otherwise we fall back to pf=1 (partial-lane
    # masked stores — still correct, just slower).
    pf = 128 // D if (D < 128 and 128 % D == 0) else 1
    Dp = D * pf

    # relu(s*(Wx+b)) == s*relu(Wx+b) for s > 0, and the last block has no ReLU,
    # so fold scale_factor into the packed weights/biases whenever s > 0.
    fold = float(scale_factor) > 0.0
    s = float(scale_factor) if fold else 1.0
    block_scale = 1.0 if fold else float(scale_factor)

    eye = jnp.eye(pf, dtype=jnp.float32)
    arrays = []
    for (w, b) in params:
        wt = jnp.asarray(w, jnp.float32).T * s                       # (in, out), folded
        bt = jnp.asarray(b, jnp.float32) * s
        arrays.append(jnp.kron(eye, wt).astype(matmul_dtype))        # (Dp, Dp) block-diag
        arrays.append(jnp.tile(bt, pf).reshape(1, Dp))               # (1, Dp) f32

    return dict(arrays=tuple(arrays), dim=D, pack_factor=pf, packed_dim=Dp,
                block_scale=block_scale)


def dummy_model_forward(embedding, packed_params, scale=1.0, tm=2048):
    """Forward pass of DummyModel using pre-packed params (see pack_dummy_model_params)."""
    D = packed_params["dim"]
    pf = packed_params["pack_factor"]
    Dp = packed_params["packed_dim"]
    arrays = packed_params["arrays"]
    block_scale = packed_params["block_scale"]

    orig_shape = embedding.shape
    assert orig_shape[-1] == D, "feature dim mismatch with packed params"
    x = embedding.reshape(-1, D)
    M = x.shape[0]
    out_dtype = x.dtype

    # Pad only to the next multiple of pf (so the (mp, Dp) reshape is a free view);
    # the ragged last grid block is handled by Pallas itself (no full pad copy).
    m_pack = -(-M // pf) * pf
    if m_pack != M:
        x = jnp.pad(x, ((0, m_pack - M), (0, 0)))
    mp = m_pack // pf
    xp = x.reshape(mp, Dp)

    # Row tile: multiple of 8, <= requested tm, and small enough to give >= ~4 grid
    # steps (>= 2 per TensorCore on v7x megacore) when the problem allows it.
    target_steps = 4
    tm_occ = ((-(-mp // target_steps) + 7) // 8) * 8
    tm = max(8, min(((int(tm) + 7) // 8) * 8, tm_occ))
    grid = (pl.cdiv(mp, tm),)

    in_itemsize = jnp.dtype(x.dtype).itemsize
    out_itemsize = jnp.dtype(out_dtype).itemsize
    w_itemsize = jnp.dtype(arrays[0].dtype).itemsize
    param_bytes = 3 * (Dp * Dp * w_itemsize + Dp * 4)

    # Double-buffered in/out tiles + VMEM-resident params, with generous margin.
    vmem_need = 2 * tm * Dp * (in_itemsize + out_itemsize) + param_bytes
    vmem_limit = int(min(max(2 * vmem_need, 32 * 2 ** 20), 64 * 2 ** 20))

    cost = pl.CostEstimate(
        flops=3 * 2 * mp * Dp * Dp,          # actual MXU work on the packed tiles
        transcendentals=0,
        bytes_accessed=mp * Dp * (in_itemsize + out_itemsize) + param_bytes,
    )

    kernel = _make_kernel(float(block_scale), float(scale))
    # Grid-invariant weights/biases: whole-array VMEM residents (no double-buffering).
    param_spec = pl.BlockSpec(memory_space=pltpu.MemorySpace.VMEM)

    out = pl.pallas_call(
        kernel,
        out_shape=jax.ShapeDtypeStruct((mp, Dp), out_dtype),
        grid_spec=pl.GridSpec(
            grid=grid,
            in_specs=[
                pl.BlockSpec((tm, Dp), lambda i: (i, 0)),   # x row tile
                param_spec, param_spec,                     # block_0 W, b
                param_spec, param_spec,                     # block_1 W, b
                param_spec, param_spec,                     # block_2 W, b
            ],
            out_specs=pl.BlockSpec((tm, Dp), lambda i: (i, 0)),
        ),
        compiler_params=pltpu.CompilerParams(
            dimension_semantics=("parallel",),
            vmem_limit_bytes=vmem_limit,
        ),
        cost_estimate=cost,
    )(xp, *arrays)

    out = out.reshape(mp * pf, D)[:M]
    return out.reshape(orig_shape)


def _reference_forward(embedding, params, scale=1.0, scale_factor=1.0):
    """Pure-JAX reference mirroring the PyTorch module semantics."""
    h = embedding
    n = len(params)
    for i, (w, b) in enumerate(params):
        a = jnp.einsum("...i,oi->...o", h, w) + b
        if i < n - 1:                     # apply_relu = i < len(hidden_dims) - 2
            a = jnp.maximum(a, 0.0)
        h = a * scale_factor + h
    return h * scale


if __name__ == "__main__":
    hidden_dims = (64, 64, 64, 64)
    D = hidden_dims[0]

    key = jax.random.PRNGKey(0)
    keys = jax.random.split(key, 2 + 2 * (len(hidden_dims) - 1))

    # Deterministic parameter init (PyTorch Linear convention: W (out,in), b (out,))
    params = []
    for i in range(len(hidden_dims) - 1):
        fan_in = hidden_dims[i]
        bound = 1.0 / (fan_in ** 0.5)
        w = jax.random.uniform(keys[2 + 2 * i], (hidden_dims[i + 1], fan_in),
                               minval=-bound, maxval=bound, dtype=jnp.float32)
        b = jax.random.uniform(keys[3 + 2 * i], (hidden_dims[i + 1],),
                               minval=-bound, maxval=bound, dtype=jnp.float32)
        params.append((w, b))

    # Case 1: strict-tolerance structural check (f32 MXU inputs), ragged row count,
    # folded non-trivial scale_factor, and a final output scale.
    packed_f32 = pack_dummy_model_params(params, scale_factor=0.5,
                                         matmul_dtype=jnp.float32)
    emb1 = jax.random.normal(keys[0], (3, 37, D), dtype=jnp.float32)
    out1 = jax.block_until_ready(dummy_model_forward(emb1, packed_f32, scale=0.5))
    ref1 = _reference_forward(emb1, params, scale=0.5, scale_factor=0.5)
    assert out1.shape == emb1.shape
    assert jnp.allclose(out1, ref1, atol=1e-4, rtol=1e-4), "mismatch vs reference (f32 path)"

    # Case 2: default fast path (bf16 MXU inputs, f32 accumulation), default
    # DummyModel semantics (scale_factor=1.0, scale=1.0).  Tolerance reflects
    # bf16 input rounding over K=64 across three residual blocks.
    packed_bf16 = pack_dummy_model_params(params)   # scale_factor=1.0, bf16 weights
    emb2 = jax.random.normal(keys[1], (2, 8, D), dtype=jnp.float32)
    out2 = jax.block_until_ready(dummy_model_forward(emb2, packed_bf16, scale=1.0))
    ref2 = _reference_forward(emb2, params, scale=1.0)
    assert out2.shape == emb2.shape
    assert jnp.allclose(out2, ref2, atol=7.5e-2, rtol=7.5e-2), "mismatch vs reference (bf16 path)"

    print("KERNEL_OK")
</pallas_src>

<mosaic_0001>
module attributes {stable_mosaic.version = 11 : i64} {
  func.func @kernel(%arg0: i32, %arg1: memref<16x128xf32, #tpu.memory_space<vmem>>, %arg2: memref<128x128xf32, #tpu.memory_space<vmem>>, %arg3: memref<1x128xf32, #tpu.memory_space<vmem>>, %arg4: memref<128x128xf32, #tpu.memory_space<vmem>>, %arg5: memref<1x128xf32, #tpu.memory_space<vmem>>, %arg6: memref<128x128xf32, #tpu.memory_space<vmem>>, %arg7: memref<1x128xf32, #tpu.memory_space<vmem>>, %arg8: memref<16x128xf32, #tpu.memory_space<vmem>>) attributes {dimension_semantics = [#tpu.dimension_semantics<parallel>], iteration_bounds = array<i64: 4>, scalar_prefetch = 0 : i64, scratch_operands = 0 : i64, tpu.core_type = #tpu.core_type<tc>, window_params = [{transform_indices = @transform_0, window_bounds = array<i64: 16, 128>}, {pipeline_mode = #tpu.pipeline_mode<synchronous>, transform_indices = @transform_1, window_bounds = array<i64: 128, 128>}, {pipeline_mode = #tpu.pipeline_mode<synchronous>, transform_indices = @transform_2, window_bounds = array<i64: 1, 128>}, {pipeline_mode = #tpu.pipeline_mode<synchronous>, transform_indices = @transform_3, window_bounds = array<i64: 128, 128>}, {pipeline_mode = #tpu.pipeline_mode<synchronous>, transform_indices = @transform_4, window_bounds = array<i64: 1, 128>}, {pipeline_mode = #tpu.pipeline_mode<synchronous>, transform_indices = @transform_5, window_bounds = array<i64: 128, 128>}, {pipeline_mode = #tpu.pipeline_mode<synchronous>, transform_indices = @transform_6, window_bounds = array<i64: 1, 128>}, {transform_indices = @transform_7, window_bounds = array<i64: 16, 128>}]} {
    %c0 = arith.constant 0 : index
    %c0_0 = arith.constant 0 : index
    %0 = vector.load %arg1[%c0, %c0_0] : memref<16x128xf32, #tpu.memory_space<vmem>>, vector<16x128xf32>
    %c0_1 = arith.constant 0 : index
    %c0_2 = arith.constant 0 : index
    %1 = vector.load %arg2[%c0_1, %c0_2] : memref<128x128xf32, #tpu.memory_space<vmem>>, vector<128x128xf32>
    %cst = arith.constant dense<0.000000e+00> : vector<16x128xf32>
    %2 = tpu.matmul %0, %1, %cst {dimension_numbers = #tpu.dot_dimension_numbers<[1], [0], [0], [1], [0, 0, 1, 1], [], []>} : vector<16x128xf32>, vector<128x128xf32>, vector<16x128xf32> -> vector<16x128xf32>
    %c0_3 = arith.constant 0 : index
    %c0_4 = arith.constant 0 : index
    %3 = vector.load %arg3[%c0_3, %c0_4] : memref<1x128xf32, #tpu.memory_space<vmem>>, vector<1x128xf32>
    %4 = vector.broadcast %3 : vector<1x128xf32> to vector<16x128xf32>
    %5 = arith.addf %2, %4 : vector<16x128xf32>
    %cst_5 = arith.constant 0.000000e+00 : f32
    %6 = vector.broadcast %cst_5 : f32 to vector<16x128xf32>
    %7 = arith.maximumf %5, %6 : vector<16x128xf32>
    %8 = arith.addf %7, %0 : vector<16x128xf32>
    %c0_6 = arith.constant 0 : index
    %c0_7 = arith.constant 0 : index
    %9 = vector.load %arg4[%c0_6, %c0_7] : memref<128x128xf32, #tpu.memory_space<vmem>>, vector<128x128xf32>
    %cst_8 = arith.constant dense<0.000000e+00> : vector<16x128xf32>
    %10 = tpu.matmul %8, %9, %cst_8 {dimension_numbers = #tpu.dot_dimension_numbers<[1], [0], [0], [1], [0, 0, 1, 1], [], []>} : vector<16x128xf32>, vector<128x128xf32>, vector<16x128xf32> -> vector<16x128xf32>
    %c0_9 = arith.constant 0 : index
    %c0_10 = arith.constant 0 : index
    %11 = vector.load %arg5[%c0_9, %c0_10] : memref<1x128xf32, #tpu.memory_space<vmem>>, vector<1x128xf32>
    %12 = vector.broadcast %11 : vector<1x128xf32> to vector<16x128xf32>
    %13 = arith.addf %10, %12 : vector<16x128xf32>
    %cst_11 = arith.constant 0.000000e+00 : f32
    %14 = vector.broadcast %cst_11 : f32 to vector<16x128xf32>
    %15 = arith.maximumf %13, %14 : vector<16x128xf32>
    %16 = arith.addf %15, %8 : vector<16x128xf32>
    %c0_12 = arith.constant 0 : index
    %c0_13 = arith.constant 0 : index
    %17 = vector.load %arg6[%c0_12, %c0_13] : memref<128x128xf32, #tpu.memory_space<vmem>>, vector<128x128xf32>
    %cst_14 = arith.constant dense<0.000000e+00> : vector<16x128xf32>
    %18 = tpu.matmul %16, %17, %cst_14 {dimension_numbers = #tpu.dot_dimension_numbers<[1], [0], [0], [1], [0, 0, 1, 1], [], []>} : vector<16x128xf32>, vector<128x128xf32>, vector<16x128xf32> -> vector<16x128xf32>
    %c0_15 = arith.constant 0 : index
    %c0_16 = arith.constant 0 : index
    %19 = vector.load %arg7[%c0_15, %c0_16] : memref<1x128xf32, #tpu.memory_space<vmem>>, vector<1x128xf32>
    %20 = vector.broadcast %19 : vector<1x128xf32> to vector<16x128xf32>
    %21 = arith.addf %18, %20 : vector<16x128xf32>
    %22 = arith.addf %21, %16 : vector<16x128xf32>
    %cst_17 = arith.constant 5.000000e-01 : f32
    %23 = vector.broadcast %cst_17 : f32 to vector<16x128xf32>
    %24 = arith.mulf %22, %23 : vector<16x128xf32>
    %c0_18 = arith.constant 0 : index
    %c0_19 = arith.constant 0 : index
    %25 = vector.load %arg8[%c0_18, %c0_19] : memref<16x128xf32, #tpu.memory_space<vmem>>, vector<16x128xf32>
    tpu.vector_store %arg8[%c0_18, %c0_19], %24 {strides = array<i32>} : memref<16x128xf32, #tpu.memory_space<vmem>>, vector<16x128xf32>,
    return
  }
  func.func @transform_0(%arg0: i32) -> (i32, i32) {
    %c0_i32 = arith.constant 0 : i32
    %c0_i32_0 = arith.constant 0 : i32
    return %arg0, %c0_i32 : i32, i32
  }
  func.func @transform_1(%arg0: i32) -> (i32, i32) {
    %c0_i32 = arith.constant 0 : i32
    %c0_i32_0 = arith.constant 0 : i32
    %c0_i32_1 = arith.constant 0 : i32
    return %c0_i32, %c0_i32_0 : i32, i32
  }
  func.func @transform_2(%arg0: i32) -> (i32, i32) {
    %c0_i32 = arith.constant 0 : i32
    %c0_i32_0 = arith.constant 0 : i32
    %c0_i32_1 = arith.constant 0 : i32
    return %c0_i32, %c0_i32_0 : i32, i32
  }
  func.func @transform_3(%arg0: i32) -> (i32, i32) {
    %c0_i32 = arith.constant 0 : i32
    %c0_i32_0 = arith.constant 0 : i32
    %c0_i32_1 = arith.constant 0 : i32
    return %c0_i32, %c0_i32_0 : i32, i32
  }
  func.func @transform_4(%arg0: i32) -> (i32, i32) {
    %c0_i32 = arith.constant 0 : i32
    %c0_i32_0 = arith.constant 0 : i32
    %c0_i32_1 = arith.constant 0 : i32
    return %c0_i32, %c0_i32_0 : i32, i32
  }
  func.func @transform_5(%arg0: i32) -> (i32, i32) {
    %c0_i32 = arith.constant 0 : i32
    %c0_i32_0 = arith.constant 0 : i32
    %c0_i32_1 = arith.constant 0 : i32
    return %c0_i32, %c0_i32_0 : i32, i32
  }
  func.func @transform_6(%arg0: i32) -> (i32, i32) {
    %c0_i32 = arith.constant 0 : i32
    %c0_i32_0 = arith.constant 0 : i32
    %c0_i32_1 = arith.constant 0 : i32
    return %c0_i32, %c0_i32_0 : i32, i32
  }
  func.func @transform_7(%arg0: i32) -> (i32, i32) {
    %c0_i32 = arith.constant 0 : i32
    %c0_i32_0 = arith.constant 0 : i32
    return %arg0, %c0_i32 : i32, i32
  }
}

</mosaic_0001>

<bundles_post_ra>
// kernel: tpu_custom_call.1
= control target key start
LH: loop header
LB: loop body
LE: loop exit
PB: predicated region body
PF: predicated region fallthrough
CT: control target
= control target key end

     0   :  { %s1686_s0 = inlined_call_operand.hbm [shape: f32[56,128], index: 0, kind: input, shape index: {}]   ;;  %s1687_s1 = inlined_call_operand.hbm [shape: f32[128,128], index: 1, kind: input, shape index: {}]   ;;  %s1688_s2 = inlined_call_operand.vmem [shape: f32[1,128], index: 2, kind: input, shape index: {}]   ;;  %s1689_s3 = inlined_call_operand.hbm [shape: f32[128,128], index: 3, kind: input, shape index: {}]   ;;  %s1690_s4 = inlined_call_operand.vmem [shape: f32[1,128], index: 4, kind: input, shape index: {}]   ;;  %s1691_s5 = inlined_call_operand.hbm [shape: f32[128,128], index: 5, kind: input, shape index: {}]   ;;  %s1692_s6 = inlined_call_operand.vmem [shape: f32[1,128], index: 6, kind: input, shape index: {}]   ;;  %s1693_s7 = inlined_call_operand.hbm [shape: f32[56,128], index: 7, kind: output, shape index: {}]  }
   0x1   :  { %1701 = sst [smem:[#allocation19_spill]] %s1687_s1 }
   0x2   :  { %12 = vsyncpa [#allocation3], 0 }
   0x3   :  { %14 = vsyncpa [#allocation3 + $0x1], 0 }
   0x4   :  { %15 = vsyncpa [#allocation6], 0 }
   0x5   :  { %16 = vsyncpa [#allocation9], 0 }
   0x6   :  { %17 = vsyncpa [#allocation4], 0 }
   0x7   :  { %19 = vsyncpa [#allocation4 + $0x1], 0  ;;  %s1392_s24 = smov 0   ;;  %s1394_s25 = smov 0  }
   0x8   :  { %s1396_s26 = smov 0   ;;  %s1398_s27 = smov 0  }
   0x9 LB: > { %1702 = sst [smem:[#allocation15_spill]] %s1327_s24  ;;  %s1413_s28 = sadd.s32 4294967295, %s1339_s27   ;;  %s1339_s27 = sphi %s1398_s27, %s1725_s27   ;;  %s1335_s26 = sphi %s1396_s26, %s1729_s26   ;;  %s1331_s25 = sphi %s1394_s25, %s1728_s25   ;;  %s1327_s24 = sphi %s1392_s24, %s1727_s24  }
   0xa   : > { %s789_s29 = sadd.s32 4294967294, %s1339_s27   ;;  %s1417_s30 = sadd.s32 1, %s1339_s27  }
   0xb   : > { %1703 = sst [smem:[#allocation16_spill]] %s1417_s30  ;;  %s32_s8 = sadd.s32 1, %s1335_s26 }
   0xc   : > { %s29_s9 = ssub.s32 %s1339_s27, %s1417_s30  ;;  %p39_p0 = scmp.ne.s32.totalorder %s1335_s26, %s1331_s25 }
   0xd   : > { %p30_p1 = scmp.eq.s32.totalorder %s29_s9, 0  ;;  %p40_p2 = scmp.eq.s32.totalorder %s1339_s27, 0 }
   0xe   : > { %p45_p3 = scmp.ne.s32.totalorder %s1331_s25, %s1327_s24  ;;  %p1694_p4 = scmp.eq.s32.totalorder %s1413_s28, 0 }
   0xf   : > { %s1429_s10 = scalar_select %p30_p1, %s1335_s26, %s32_s8  }
  0x10   : > { %p1431_p5 = por %p40_p2, %p39_p0  ;;  %p1437_p6 = por %p1694_p4, %p45_p3 }
  0x11   : > { %1704 = sst [smem:[#allocation17_spill]] %s1429_s10  ;;  %p195_p7 = scmp.eq.s32.totalorder %s1413_s28, 3 }
  0x12   : > { %s1705_s11 = scalar_select %p1431_p5, 1, 0 }
  0x13   : > { %s1706_s12 = scalar_select %p1437_p6, 1, 0 }
  0x14   : > { %p201_p8 = scmp.eq.s32.totalorder %s789_s29, 3  ;;  %p790_p9 = scmp.ge.s32.totalorder %s1339_s27, 1 }
  0x15   : > { %p208_p10 = scmp.lt.s32.totalorder %s1339_s27, 5  ;;  %p1444_p11 = por %p195_p7, %p39_p0 }
  0x16   : > { %p1448_p12 = por %p201_p8, %p45_p3  ;;  %s1341_s16 = smov [#allocation5]  }
  0x17   : > { %s1707_s13 = scalar_select %p1444_p11, 1, 0 }
  0x18   : > { %s1708_s14 = scalar_select %p1448_p12, 1, 0 }
  0x19   : > { %p1452_p13 = pnand %p790_p9, %p208_p10  ;;  %s220_s17 = sshll.u32 %s1341_s16, 4  ;;  %s221_s17 = int_to_ptr.vmem [resolvable:$true] %s220_s17 }
  0x1a   : > { %1709 = sst [smem:[#allocation18_spill]] %s1708_s14  ;;  %s1342_s19 = smov [#allocation7]  }
  0x1b   : > { %s1710_s15 = scalar_select %p1452_p13, 1, 0 }
  0x1c   : > { %p1091_p1 = pneg %p1452_p13  ;;  %s236_s20 = sshll.u32 %s1342_s19, 4  ;;  %s1464_s20 = int_to_ptr.vmem [resolvable:$true] %s236_s20 }
  0x1d   : > { %s1712_s1 = sld [smem:[#allocation19_spill]] }
  0x1e   : > { %p1460_p2 = pnand %p1091_p1, %p1694_p4 }
  0x20   : > { %p1474_p3 = pneg %p1460_p2 }
  0x23   : > { %s1153_s23 = scalar_lea.hbm %s1712_s1, 2048 }
  0x24   : > { %p1154_p0 = scmp.ne.s32.totalorder %s1712_s1, %s1153_s23  ;;  %p1160_p9 = scmp.lt.u32.totalorder %s1153_s23, %s1712_s1 }
  0x26   : > { %p1156_p7 = pnand %p1474_p3, %p1154_p0 }
  0x28   : > { %p1157_p8 = pneg %p1156_p7 }
  0x2a   : > { %p1162_p10 = pnand %p1160_p9, %p1157_p8 }
  0x2c   : > { %1165 = shalt.err (!%p1162_p10)
}
  0x2d   : > { %s1166_s21 = scalar_lea.vmem %s221_s17, 2048  ;;  %p1174_p11 = scmp.lt.s32.totalorder %s221_s17, %s221_s17 }
  0x2e   : > { %p1167_p1 = scmp.ne.s32.totalorder %s221_s17, %s1166_s21  ;;  %p1175_p6 = scmp.lt.s32.totalorder %s1166_s21, %s1166_s21 }
  0x30   : > { %p1169_p4 = pnand %p1167_p1, %p1474_p3  ;;  %p1176_p13 = por %p1175_p6, %p1174_p11 }
  0x32   : > { %p1170_p12 = pneg %p1169_p4 }
  0x34   : > { %p1177_p5 = pnand %p1176_p13, %p1170_p12 }
  0x36   : > { %1180 = shalt.err (!%p1177_p5)
}
  0x37   : > { %s1343_s22 = smov 128   ;;  %s1344_s29 = smov 8  }
  0x38   : > { %1094 = dma.hbm_to_vmem [thread:$0]  (!%p1460_p2), %s1712_s1, 2048, %s221_s17, [#allocation6], %s1343_s22, %s1343_s22, %s1344_s29  }
  0x39   : > { %s1181_s10 = scalar_lea.hbm %s1689_s3, 2048 }
  0x3a   : > { %p1182_p4 = scmp.ne.s32.totalorder %s1689_s3, %s1181_s10  ;;  %p1188_p11 = scmp.lt.u32.totalorder %s1181_s10, %s1689_s3 }
  0x3c   : > { %p1184_p5 = pnand %p1182_p4, %p1474_p3 }
  0x3e   : > { %p1185_p6 = pneg %p1184_p5 }
  0x40   : > { %p1190_p12 = pnand %p1188_p11, %p1185_p6 }
  0x42   : > { %1193 = shalt.err (!%p1190_p12)
}
  0x43   : > { %s1194_s17 = scalar_lea.vmem %s1464_s20, 2048  ;;  %p1202_p8 = scmp.lt.s32.totalorder %s1464_s20, %s1464_s20 }
  0x44   : > { %p1195_p13 = scmp.ne.s32.totalorder %s1464_s20, %s1194_s17  ;;  %p1203_p9 = scmp.lt.s32.totalorder %s1194_s17, %s1194_s17 }
  0x46   : > { %p1197_p0 = pnand %p1195_p13, %p1474_p3  ;;  %p1204_p10 = por %p1203_p9, %p1202_p8 }
  0x48   : > { %p1198_p7 = pneg %p1197_p0 }
  0x4a   : > { %p1205_p1 = pnand %p1204_p10, %p1198_p7 }
  0x4c   : > { %1208 = shalt.err (!%p1205_p1)
}
  0x4d   : > { %1097 = dma.hbm_to_vmem [thread:$0]  (!%p1460_p2), %s1689_s3, 2048, %s1464_s20, [#allocation6], %s1343_s22, %s1343_s22, %s1344_s29  }
  0x4e   : > { %s1345_s10 = smov [#allocation8]   ;;  %s1209_s16 = scalar_lea.hbm %s1691_s5, 2048 }
  0x4f   : > { %s252_s14 = sshll.u32 %s1345_s10, 4  ;;  %p1210_p4 = scmp.ne.s32.totalorder %s1691_s5, %s1209_s16  ;;  %s253_s14 = int_to_ptr.vmem [resolvable:$true] %s252_s14 }
  0x50   : > { %p1216_p11 = scmp.lt.u32.totalorder %s1209_s16, %s1691_s5 }
  0x51   : > { %p1212_p5 = pnand %p1210_p4, %p1474_p3 }
  0x53   : > { %p1213_p6 = pneg %p1212_p5 }
  0x55   : > { %p1218_p12 = pnand %p1216_p11, %p1213_p6 }
  0x57   : > { %1221 = shalt.err (!%p1218_p12)
}
  0x58   : > { %s1222_s20 = scalar_lea.vmem %s253_s14, 2048  ;;  %p1230_p8 = scmp.lt.s32.totalorder %s253_s14, %s253_s14 }
  0x59   : > { %p1223_p13 = scmp.ne.s32.totalorder %s253_s14, %s1222_s20  ;;  %p1231_p9 = scmp.lt.s32.totalorder %s1222_s20, %s1222_s20 }
  0x5b   : > { %p1225_p0 = pnand %p1223_p13, %p1474_p3  ;;  %p1232_p10 = por %p1231_p9, %p1230_p8 }
  0x5d   : > { %p1226_p7 = pneg %p1225_p0 }
  0x5f   : > { %p1233_p1 = pnand %p1232_p10, %p1226_p7 }
  0x61   : > { %1236 = shalt.err (!%p1233_p1)
}
  0x62   : > { %1100 = dma.hbm_to_vmem [thread:$0]  (!%p1460_p2), %s1691_s5, 2048, %s253_s14, [#allocation9], %s1343_s22, %s1343_s22, %s1344_s29  }
  0x63   : > { %p794_p4 = scmp.ge.s32.totalorder %s1339_s27, 4 }
  0x64   : > { %p1714_p3 = scmp.ne.s32.totalorder (!%p794_p4), %s1705_s11, 0 }
  0x65   : > { %265 = sbr.rel (%p794_p4) target bundleno = 143 (0x8f), region = 40 }
  0x6c   : > { %268 = sbr.rel (!%p1714_p3) target bundleno = 143 (0x8f), region = 44  ;;  %s269_s9 = sand.u32 (%p1714_p3), 1, %s1335_s26  }
  0x6d   : > { %s796_s30 = sshll.u32 (%p1714_p3), %s1339_s27, 1  ;;  %s795_s10 = sshll.u32 (%p1714_p3), %s269_s9, 4 }
  0x6e   : > { %s275_s23 = ssub.s32 (%p1714_p3), 7, %s796_s30  ;;  %s1548_s16 = scalar_lea.sflag (%p1714_p3), [#allocation3], %s269_s9 }
  0x6f   : > { %p276_p5 = scmp.lt.s32.totalorder (%p1714_p3), %s275_s23, 2  ;;  %s273_s22 = scalar_lea.vmem (%p1714_p3), [#allocation2], %s795_s10 }
  0x73   : > { %s1731_s23 = smov (!%p276_p5, %s275_s23), 2 }
  0x74   : > { %s1545_s18 = sshll.u32 %s1731_s23, 7 }
  0x75   : > { %s280_s8 = ssub.s32 256, %s1545_s18 }
  0x76   : > { %281 = vsyncadd %s1548_s16, %s280_s8  ;;  %p798_p2 = scmp.ne.s32.totalorder %s1545_s18, 0  ;;  %s820_s11 = sshll.u32 %s1339_s27, 8 }
  0x77   : > { %s1556_s19 = scalar_lea.hbm %s1686_s0, %s820_s11  ;;  %s286_s21 = sshll.u32 %s273_s22, 4  ;;  %s1558_s21 = int_to_ptr.vmem [resolvable:$true] %s286_s21 }
  0x78   : > { %s1237_s17 = scalar_lea.hbm %s1556_s19, %s1545_s18  ;;  %s1241_s24 = scalar_lea.hbm %s1686_s0, 896 }
  0x79   : > { %p1238_p6 = scmp.ne.s32.totalorder %s1556_s19, %s1237_s17  ;;  %p1242_p13 = scmp.lt.u32.totalorder %s1556_s19, %s1686_s0 }
  0x7a   : > { %p1243_p0 = scmp.lt.u32.totalorder %s1241_s24, %s1237_s17  ;;  %p1245_p8 = scmp.lt.u32.totalorder %s1237_s17, %s1556_s19 }
  0x7b   : > { %p1239_p11 = pnand %p1238_p6, %p798_p2 }
  0x7c   : > { %p1244_p7 = por %p1243_p0, %p1242_p13 }
  0x7d   : > { %p1240_p12 = pneg %p1239_p11 }
  0x7e   : > { %p1246_p9 = por %p1245_p8, %p1244_p7 }
  0x80   : > { %p1247_p10 = pnand %p1246_p9, %p1240_p12 }
  0x82   : > { %1250 = shalt.err (!%p1247_p10)
}
  0x83   : > { %s1251_s10 = scalar_lea.vmem %s1558_s21, %s1545_s18  ;;  %s1346_s23 = smov [#allocation2]  }
  0x84   : > { %p1252_p1 = scmp.ne.s32.totalorder %s1558_s21, %s1251_s10  ;;  %s1255_s8 = sshll.u32 %s1346_s23, 4  ;;  %s1256_s8 = int_to_ptr.vmem [resolvable:$false] %s1255_s8 }
  0x85   : > { %s1257_s22 = scalar_lea.vmem %s1256_s8, 512  ;;  %p1258_p5 = scmp.lt.s32.totalorder %s1558_s21, %s1256_s8 }
  0x86   : > { %p1253_p4 = pnand %p1252_p1, %p798_p2  ;;  %p1259_p6 = scmp.lt.s32.totalorder %s1257_s22, %s1251_s10 }
  0x88   : > { %p1254_p3 = pneg %p1253_p4  ;;  %p1260_p11 = por %p1259_p6, %p1258_p5 }
  0x8a   : > { %p1261_p13 = pnand %p1260_p11, %p1254_p3 }
  0x8c   : > { %1264 = shalt.err (!%p1261_p13)
}
  0x8d   : > { %s1347_s11 = smov 128   ;;  %s1348_s29 = smov 8  }
  0x8e   : > { %292 = dma.hbm_to_vmem [thread:$0]  (%p798_p2), %s1556_s19, %s1545_s18, %s1558_s21, %s1548_s16, %s1347_s11, %s1347_s11, %s1348_s29  }
  0x8f PF: > { %p1715_p12 = scmp.ne.s32.totalorder %s1710_s15, 0 }
  0x90   : > { %s1588_s14 = sand.u32 (!%p1715_p12), 1, %s1331_s25   ;;  %p1716_p0 = scmp.ne.s32.totalorder (!%p1715_p12), %s1706_s12, 0 }
  0x91   : > { %298 = sbr.rel (%p1715_p12) target bundleno = 882 (0x372), region = 48  ;;  %s803_s17 = sshll.u32 (!%p1715_p12), %s1588_s14, 4 }
  0x92   : > { %s301_s20 = scalar_lea.sflag (!%p1715_p12), [#allocation3], %s1588_s14  ;;  %s1594_s1 = scalar_lea.vmem (!%p1715_p12), [#allocation2], %s803_s17 }
  0x98   : > { %1310 = dma.done.wait (%p1716_p0), %s301_s20, 256  }
  0x99   : > { %1312 = vsyncadd (%p1716_p0), %s301_s20, 4294967040  ;;  %p1717_p2 = scmp.eq.s32.totalorder %s1413_s28, 0 }
  0x9b   : > { %1314 = dma.done.wait (%p1717_p2), [#allocation6], 4096   ;;  %p1718_p7 = pmov %p1717_p2 }
  0x9c   : > { %p1719_p8 = pmov %p1717_p2 }
  0x9d   : > { %1316 = vsyncadd (%p1718_p7), [#allocation6], 4294963200 }
  0x9e   : > { %1318 = dma.done.wait (%p1719_p8), [#allocation9], 2048   ;;  %p1720_p9 = pmov %p1717_p2 }
  0x9f   : > { %v359_v0 = vld [vmem:[#allocation5] sm:$0xff]  ;;  %v360_v1 = vld [vmem:[#allocation5 + $0x8] sm:$0xff]  ;;  %v361_v2 = vld [vmem:[#allocation5 + $0x10] sm:$0xff]  ;;  %s346_s24 = scalar_lea.vmem [#allocation10], %s803_s17  ;;  %s668_s9 = scalar_lea.sflag [#allocation4], %s1588_s14 }
  0xa0   : > { %1320 = vsyncadd (%p1720_p9), [#allocation9], 4294965248  ;;  %v981_v3 = vpack.c.bf16 %v360_v1, %v359_v0  ;;  %v362_v4 = vld [vmem:[#allocation5 + $0x18] sm:$0xff]  ;;  %v363_v6 = vld [vmem:[#allocation5 + $0x20] sm:$0xff]  ;;  %p1721_p10 = scmp.ne.s32.totalorder %s1707_s13, 0 }
  0xa1   : > { %v985_v5 = vpack.c.bf16 %v362_v4, %v361_v2  ;;  %v364_v7 = vld [vmem:[#allocation5 + $0x28] sm:$0xff]  ;;  %v365_v9 = vld [vmem:[#allocation5 + $0x30] sm:$0xff]  ;;  %v366_v10 = vld [vmem:[#allocation5 + $0x38] sm:$0xff]  ;;  %s812_s30 = sshll.u32 (%p1721_p10), %s1413_s28, 1 }
  0xa2   : > { %982 = vmatprep.subr.bf16.mxu0 %v981_v3  ;;  %v989_v8 = vpack.c.bf16 %v364_v7, %v363_v6  ;;  %v1609_v11 = vld [vmem:[%s1594_s1] sm:$0xff]  ;;  %v462_v13 = vld [vmem:[#allocation7 + $0x8] sm:$0xff]  ;;  %v464_v16 = vld [vmem:[#allocation7 + $0x18] sm:$0xff]  ;;  %v993_v20 = vpack.c.bf16 %v366_v10, %v365_v9  ;;  %s676_s10 = ssub.s32 (%p1721_p10), 7, %s812_s30 }
  0xa3   : > { %984 = vmatpush3.bf16.msra.mxu0 %v981_v3  ;;  %908 = vmatprep.mubr.f32.mxu0 %v1609_v11  ;;  %v461_v12 = vld [vmem:[#allocation7] sm:$0xff]  ;;  %v463_v14 = vld [vmem:[#allocation7 + $0x10] sm:$0xff]  ;;  %v466_v19 = vld [vmem:[#allocation7 + $0x28] sm:$0xff]  ;;  %p677_p1 = scmp.lt.s32.totalorder (%p1721_p10), %s676_s10, 2 }
  0xa4   : > { %986 = vmatprep.subr.bf16.mxu0 %v985_v5  ;;  %v1013_v15 = vpack.c.bf16 %v462_v13, %v461_v12  ;;  %v1017_v17 = vpack.c.bf16 %v464_v16, %v463_v14  ;;  %v465_v18 = vld [vmem:[#allocation7 + $0x20] sm:$0xff]  ;;  %v368_v22 = vld [vmem:[#allocation5 + $0x48] sm:$0xff]  ;;  %v467_v24 = vld [vmem:[#allocation7 + $0x30] sm:$0xff] }
  0xa5   : > { %v367_v21 = vld [vmem:[#allocation5 + $0x40] sm:$0xff]  ;;  %v1021_v23 = vpack.c.bf16 %v466_v19, %v465_v18  ;;  %v468_v25 = vld [vmem:[#allocation7 + $0x38] sm:$0xff]  ;;  %v369_v27 = vld [vmem:[#allocation5 + $0x50] sm:$0xff] }
  0xa6   : > { %1014 = vmatprep.subr.bf16.mxu1 %v1013_v15  ;;  %v997_v26 = vpack.c.bf16 %v368_v22, %v367_v21  ;;  %v370_v28 = vld [vmem:[#allocation5 + $0x58] sm:$0xff]  ;;  %v1025_v29 = vpack.c.bf16 %v468_v25, %v467_v24  ;;  %v469_v30 = vld [vmem:[#allocation7 + $0x40] sm:$0xff]  ;;  %v470_v31 = vld [vmem:[#allocation7 + $0x48] sm:$0xff] }
  0xa7   : > { %988 = vmatpush3.bf16.msra.mxu0 %v985_v5  ;;  %1016 = vmatpush3.bf16.msra.mxu1 %v1013_v15  ;;  %v1001_v32 = vpack.c.bf16 %v370_v28, %v369_v27  ;;  %v371_v33 = vld [vmem:[#allocation5 + $0x60] sm:$0xff]  ;;  %v372_v34 = vld [vmem:[#allocation5 + $0x68] sm:$0xff]  ;;  %v1029_v35 = vpack.c.bf16 %v470_v31, %v469_v30  ;;  %v471_v36 = vld [vmem:[#allocation7 + $0x50] sm:$0xff] }
  0xa8   : > { %990 = vmatprep.subr.bf16.mxu0 %v989_v8  ;;  %1018 = vmatprep.subr.bf16.mxu1 %v1017_v17  ;;  %v472_v37 = vld [vmem:[#allocation7 + $0x58] sm:$0xff]  ;;  %v1005_v38 = vpack.c.bf16 %v372_v34, %v371_v33  ;;  %v373_v39 = vld [vmem:[#allocation5 + $0x70] sm:$0xff]  ;;  %v473_v44 = vld [vmem:[#allocation7 + $0x60] sm:$0xff] }
  0xa9   : > { %v374_v40 = vld [vmem:[#allocation5 + $0x78] sm:$0xff]  ;;  %v1033_v41 = vpack.c.bf16 %v472_v37, %v471_v36  ;;  %v474_v45 = vld [vmem:[#allocation7 + $0x68] sm:$0xff]  ;;  %v475_v47 = vld [vmem:[#allocation7 + $0x70] sm:$0xff] }
  0xaa   : > { %v1009_v42 = vpack.c.bf16 %v374_v40, %v373_v39  ;;  %v358_v43 = vld [vmem:[%s1594_s1 + $0x8] sm:$0xff]  ;;  %v1037_v46 = vpack.c.bf16 %v474_v45, %v473_v44  ;;  %v563_v50 = vld [vmem:[#allocation8] sm:$0xff]  ;;  %v565_v52 = vld [vmem:[#allocation8 + $0x10] sm:$0xff] }
  0xab   : > { %992 = vmatpush3.bf16.msra.mxu0 %v989_v8  ;;  %1020 = vmatpush3.bf16.msra.mxu1 %v1017_v17  ;;  %v476_v48 = vld [vmem:[#allocation7 + $0x78] sm:$0xff]  ;;  %v564_v51 = vld [vmem:[#allocation8 + $0x8] sm:$0xff]  ;;  %v567_v56 = vld [vmem:[#allocation8 + $0x20] sm:$0xff] }
  0xac   : > { %994 = vmatprep.subr.bf16.mxu0 %v993_v20  ;;  %1022 = vmatprep.subr.bf16.mxu1 %v1021_v23  ;;  %v1041_v49 = vpack.c.bf16 %v476_v48, %v475_v47  ;;  %v1045_v53 = vpack.c.bf16 %v564_v51, %v563_v50  ;;  %v566_v54 = vld [vmem:[#allocation8 + $0x18] sm:$0xff]  ;;  %v568_v57 = vld [vmem:[#allocation8 + $0x28] sm:$0xff]  ;;  %v569_v59 = vld [vmem:[#allocation8 + $0x30] sm:$0xff] }
  0xad   : > { %v1049_v55 = vpack.c.bf16 %v566_v54, %v565_v52  ;;  %v1053_v58 = vpack.c.bf16 %v568_v57, %v567_v56  ;;  %v570_v60 = vld [vmem:[#allocation8 + $0x38] sm:$0xff]  ;;  %v571_v62 = vld [vmem:[#allocation8 + $0x40] sm:$0xff]  ;;  %v572_v63 = vld [vmem:[#allocation8 + $0x48] sm:$0xff] }
  0xae   : > { %v1057_v61 = vpack.c.bf16 %v570_v60, %v569_v59  ;;  %v1061_v0 = vpack.c.bf16 %v572_v63, %v571_v62  ;;  %v573_v1 = vld [vmem:[#allocation8 + $0x50] sm:$0xff]  ;;  %v574_v2 = vld [vmem:[#allocation8 + $0x58] sm:$0xff]  ;;  %v808_v4 = vld [vmem:[%s1688_s2] ss:$0 sm:$0xff] }
  0xaf   : > { %996 = vmatpush3.bf16.msra.mxu0 %v993_v20  ;;  %1024 = vmatpush3.bf16.msra.mxu1 %v1021_v23  ;;  %v1065_v3 = vpack.c.bf16 %v574_v2, %v573_v1  ;;  %v575_v14 = vld [vmem:[#allocation8 + $0x60] sm:$0xff]  ;;  %v576_v15 = vld [vmem:[#allocation8 + $0x68] sm:$0xff]  ;;  %v577_v17 = vld [vmem:[#allocation8 + $0x70] sm:$0xff] }
  0xb0   : > { %998 = vmatprep.subr.bf16.mxu0 %v997_v26  ;;  %1026 = vmatprep.subr.bf16.mxu1 %v1025_v29  ;;  %v1069_v16 = vpack.c.bf16 %v576_v15, %v575_v14  ;;  %v578_v18 = vld [vmem:[#allocation8 + $0x78] sm:$0xff]  ;;  %v809_v20 = vld [vmem:[%s1690_s4] ss:$0 sm:$0xff] }
  0xb1   : > { %v1073_v19 = vpack.c.bf16 %v578_v18, %v577_v17  ;;  %v810_v28 = vld [vmem:[%s1692_s6] ss:$0 sm:$0xff] }
  0xb3   : > { %1000 = vmatpush3.bf16.msra.mxu0 %v997_v26  ;;  %1028 = vmatpush3.bf16.msra.mxu1 %v1025_v29 }
  0xb4   : > { %1002 = vmatprep.subr.bf16.mxu0 %v1001_v32  ;;  %1030 = vmatprep.subr.bf16.mxu1 %v1029_v35 }
  0xb7   : > { %1004 = vmatpush3.bf16.msra.mxu0 %v1001_v32  ;;  %1032 = vmatpush3.bf16.msra.mxu1 %v1029_v35 }
  0xb8   : > { %1006 = vmatprep.subr.bf16.mxu0 %v1005_v38  ;;  %1034 = vmatprep.subr.bf16.mxu1 %v1033_v41 }
  0xbb   : > { %1008 = vmatpush3.bf16.msra.mxu0 %v1005_v38  ;;  %1036 = vmatpush3.bf16.msra.mxu1 %v1033_v41 }
  0xbc   : > { %1010 = vmatprep.subr.bf16.mxu0 %v1009_v42  ;;  %1038 = vmatprep.subr.bf16.mxu1 %v1037_v46 }
  0xbf   : > { %1012 = vmatpush3.bf16.msra.mxu0 %v1009_v42  ;;  %1040 = vmatpush3.bf16.msra.mxu1 %v1037_v46 }
  0xc0   : > { %1042 = vmatprep.subr.bf16.mxu1 %v1041_v49  ;;  %1046 = vmatprep.subr.bf16.mxu0 %v1045_v53 }
  0xc2   : > { %909 = vmatmul.mubr.f32.vlgmr.msra.gmra.mrb[0].mxu0 %v358_v43 }
  0xc3   : > { %1044 = vmatpush3.bf16.msra.mxu1 %v1041_v49  ;;  %1048 = vmatpush3.bf16.msra.mxu0 %v1045_v53 }
  0xc4   : > { %1050 = vmatprep.subr.bf16.mxu0 %v1049_v55 }
  0xc7   : > { %1052 = vmatpush3.bf16.msra.mxu0 %v1049_v55 }
  0xc8   : > { %1054 = vmatprep.subr.bf16.mxu0 %v1053_v58 }
  0xcb   : > { %1056 = vmatpush3.bf16.msra.mxu0 %v1053_v58 }
  0xcc   : > { %1058 = vmatprep.subr.bf16.mxu0 %v1057_v61 }
  0xcf   : > { %1060 = vmatpush3.bf16.msra.mxu0 %v1057_v61 }
  0xd0   : > { %1062 = vmatprep.subr.bf16.mxu0 %v1061_v0 }
  0xd3   : > { %1064 = vmatpush3.bf16.msra.mxu0 %v1061_v0 }
  0xd4   : > { %1066 = vmatprep.subr.bf16.mxu0 %v1065_v3 }
  0xd7   : > { %1068 = vmatpush3.bf16.msra.mxu0 %v1065_v3 }
  0xd8   : > { %1070 = vmatprep.subr.bf16.mxu0 %v1069_v16 }
  0xdb   : > { %1072 = vmatpush3.bf16.msra.mxu0 %v1069_v16 }
  0xdc   : > { %1074 = vmatprep.subr.bf16.mxu0 %v1073_v19 }
  0xdf   : > { %1076 = vmatpush3.bf16.msra.mxu0 %v1073_v19 }
 0x195   : > { %v910_v5 = vpop.f32.mrb[0].mxu0 }
 0x196   : > { %v454_v6 = vadd.f32 %v910_v5, %v808_v4  ;;  %v448_v7 = vpop.f32.mrb[1].mxu0 }
 0x197   : > { %v449_v8 = vadd.f32 %v808_v4, %v448_v7 }
 0x198   : > { %v458_v9 = vmax.f32 %v454_v6, 0.0 }
 0x199   : > { %v457_v10 = vmax.f32 %v449_v8, 0.0 }
 0x19a   : > { %v460_v13 = vadd.f32 %v458_v9, %v358_v43 }
 0x19b   : > { %v459_v12 = vadd.f32 %v457_v10, %v1609_v11 }
 0x19d   : > { %943 = vmatprep.mubr.f32.mxu1 %v459_v12 }
 0x19e   : > { %944 = vmatmul.mubr.f32.vlgmr.msra.gmra.mrb[0].mxu1 %v460_v13 }
 0x271   : > { %v945_v21 = vpop.f32.mrb[0].mxu1 }
 0x272   : > { %v556_v22 = vadd.f32 %v945_v21, %v809_v20  ;;  %v550_v11 = vpop.f32.mrb[1].mxu1 }
 0x273   : > { %v551_v23 = vadd.f32 %v809_v20, %v550_v11 }
 0x274   : > { %v560_v24 = vmax.f32 %v556_v22, 0.0 }
 0x275   : > { %v559_v25 = vmax.f32 %v551_v23, 0.0 }
 0x276   : > { %v562_v27 = vadd.f32 %v560_v24, %v460_v13 }
 0x277   : > { %v561_v26 = vadd.f32 %v559_v25, %v459_v12 }
 0x279   : > { %978 = vmatprep.mubr.f32.mxu0 %v561_v26 }
 0x27a   : > { %979 = vmatmul.mubr.f32.vlgmr.msra.gmra.mrb[2].mxu0 %v562_v27 }
 0x34d   : > { %v980_v29 = vpop.f32.mrb[2].mxu0 }
 0x34e   : > { %v658_v30 = vadd.f32 %v980_v29, %v810_v28  ;;  %v652_v31 = vpop.f32.mrb[3].mxu0 }
 0x34f   : > { %v653_v32 = vadd.f32 %v810_v28, %v652_v31  ;;  %674 = sbr.rel (!%p1721_p10) target bundleno = 882 (0x372), region = 68 }
 0x350   : > { %v662_v33 = vadd.f32 %v658_v30, %v562_v27 }
 0x351   : > { %v661_v34 = vadd.f32 %v653_v32, %v561_v26 }
 0x352   : > { %v664_v35 = vmul.f32 0.5, %v662_v33 }
 0x353   : > { %v663_v36 = vmul.f32 0.5, %v661_v34 }
 0x354   : > { %666 = vst [vmem:[%s346_s24 + $0x8] sm:$0xff] %v664_v35 }
 0x355   : > { %665 = vst [vmem:[%s346_s24] sm:$0xff] %v663_v36 }
 0x356   : > { %s1733_s10 = smov (!%p677_p1, %s676_s10), 2 }
 0x357   : > { %s1629_s23 = sshll.u32 %s1733_s10, 7 }
 0x358   : > { %s681_s8 = ssub.s32 256, %s1629_s23 }
 0x359   : > { %682 = vsyncadd %s668_s9, %s681_s8  ;;  %p814_p4 = scmp.ne.s32.totalorder %s1629_s23, 0  ;;  %s821_s22 = sshll.u32 %s1413_s28, 8 }
 0x35a   : > { %s1639_s29 = scalar_lea.hbm %s1693_s7, %s821_s22  ;;  %s687_s17 = sshll.u32 %s346_s24, 4  ;;  %s1641_s17 = int_to_ptr.vmem [resolvable:$true] %s687_s17 }
 0x35b   : > { %s1265_s20 = scalar_lea.vmem %s1641_s17, %s1629_s23  ;;  %s1349_s1 = smov [#allocation10]  }
 0x35c   : > { %p1266_p3 = scmp.ne.s32.totalorder %s1641_s17, %s1265_s20  ;;  %s1269_s12 = sshll.u32 %s1349_s1, 4  ;;  %s1270_s12 = int_to_ptr.vmem [resolvable:$false] %s1269_s12 }
 0x35d   : > { %s1271_s28 = scalar_lea.vmem %s1270_s12, 512  ;;  %p1272_p11 = scmp.lt.s32.totalorder %s1641_s17, %s1270_s12 }
 0x35e   : > { %p1267_p5 = pnand %p1266_p3, %p814_p4  ;;  %p1273_p13 = scmp.lt.s32.totalorder %s1271_s28, %s1265_s20 }
 0x360   : > { %p1268_p6 = pneg %p1267_p5  ;;  %p1274_p12 = por %p1273_p13, %p1272_p11 }
 0x362   : > { %p1275_p0 = pnand %p1274_p12, %p1268_p6 }
 0x364   : > { %1278 = shalt.err (!%p1275_p0)
}
 0x365   : > { %s1279_s15 = scalar_lea.hbm %s1639_s29, %s1629_s23  ;;  %s1283_s19 = scalar_lea.hbm %s1693_s7, 896 }
 0x366   : > { %p1280_p2 = scmp.ne.s32.totalorder %s1639_s29, %s1279_s15  ;;  %p1284_p9 = scmp.lt.u32.totalorder %s1639_s29, %s1693_s7 }
 0x367   : > { %p1285_p10 = scmp.lt.u32.totalorder %s1283_s19, %s1279_s15  ;;  %p1287_p3 = scmp.lt.u32.totalorder %s1279_s15, %s1639_s29 }
 0x368   : > { %p1281_p7 = pnand %p1280_p2, %p814_p4 }
 0x369   : > { %p1286_p1 = por %p1285_p10, %p1284_p9 }
 0x36a   : > { %p1282_p8 = pneg %p1281_p7 }
 0x36b   : > { %p1288_p5 = por %p1287_p3, %p1286_p1 }
 0x36d   : > { %p1289_p6 = pnand %p1288_p5, %p1282_p8 }
 0x36f   : > { %1292 = shalt.err (!%p1289_p6)
}
 0x370   : > { %s1350_s30 = smov 128   ;;  %s1351_s10 = smov 8  }
 0x371   : > { %693 = dma.vmem_to_hbm [thread:$0]  (%p814_p4), %s1641_s17, %s1629_s23, %s1639_s29, %s668_s9, %s1350_s30, %s1350_s30, %s1351_s10  }
 0x372 PF: > { %s1722_s8 = sld [smem:[#allocation15_spill]]  ;;  %s1723_s22 = sld [smem:[#allocation18_spill]] }
 0x373   : > { %p1111_p11 = scmp.ge.s32.totalorder %s1339_s27, 2 }
 0x378   : > { %s702_s13 = sand.u32 1, %s1722_s8   ;;  %p1724_p13 = scmp.ne.s32.totalorder %s1723_s22, 0 }
 0x379   : > { %s703_s11 = scalar_lea.sflag [#allocation4], %s702_s13 }
 0x37a   : > { %p1102_p12 = pnand %p1111_p11, %p1724_p13 }
 0x37c   : > { %1322 = dma.done.wait (!%p1102_p12), %s703_s11, 256  }
 0x37d   : > { %1324 = vsyncadd (!%p1102_p12), %s703_s11, 4294967040  ;;  %s1725_s27 = sld [smem:[#allocation16_spill]]  ;;  %s1726_s20 = sld [smem:[#allocation17_spill]] }
 0x37e   : > { %s1727_s24 = smov %s1331_s25  ;;  %s1728_s25 = smov %s1335_s26 }
 0x383   : > { %p22_p0 = scmp.ge.s32.totalorder %s1725_s27, 6   ;;  %s1729_s26 = smov %s1726_s20 }
 0x385   :  { %24 = sbr.rel (!%p22_p0) target bundleno = 9 (0x9), region = 105 }
 0x38c   :  { %708 = vsyncpa [#allocation3], 1 }
 0x38d   :  { %710 = vsyncpa [#allocation3 + $0x1], 1 }
 0x38e   :  { %711 = vsyncpa [#allocation6], 1 }
 0x38f   :  { %712 = vsyncpa [#allocation9], 1 }
 0x390   :  { %713 = vsyncpa [#allocation4], 1 }
 0x391   :  { %715 = vsyncpa [#allocation4 + $0x1], 1 }

</bundles_post_ra>
